<compile_context>
chip_gen: v6e
topology: v6e:2x2x1
jax: 0.10.0
libtpu: 0.0.40
codegen_flags: <defaults>
</compile_context>

<pallas_src>
import functools

import jax
import jax.numpy as jnp
from jax.experimental import pallas as pl
from jax.experimental.pallas import tpu as pltpu


def _bce_dice_kernel(x_ref, t_ref, part_ref, inter_acc, denom_acc, bce_acc,
                     *, num_blocks, exact_grid, approx_sigmoid):
    j = pl.program_id(1)
    j_dim = pl.num_programs(1)

    @pl.when(j == 0)
    def _init():
        inter_acc[...] = jnp.zeros_like(inter_acc)
        denom_acc[...] = jnp.zeros_like(denom_acc)
        bce_acc[...] = jnp.zeros_like(bce_acc)

    n, rt, lane = x_ref.shape
    racc = inter_acc.shape[1]            # 8 when rt % 8 == 0, else rt (tiny tiles)

    def _accumulate():
        x = x_ref[...].astype(jnp.float32)       # (n, rt, lane)
        t = t_ref[...].astype(jnp.float32)

        # Shared transcendental: e = exp(-|x|) feeds both the stable-BCE log
        # term and the sigmoid (one exp + one log1p + one divide per element).
        e = jnp.exp(-jnp.abs(x))
        bce_elem = jnp.maximum(x, 0.0) - x * t + jnp.log1p(e)
        numer = jnp.where(x >= 0.0, 1.0, e)      # sigmoid numerator (exact form)
        if approx_sigmoid:
            # v7x micro-opt: single EUP vrcp instead of refined f32 divide.
            s = numer * pl.reciprocal(1.0 + e, approx=True)
        else:
            s = numer / (1.0 + e)

        def _fold(v):
            # In-tile partial row reduction (review item #1): sum groups of
            # `racc` (=8) rows with pure VALU vreg adds over static, 8-aligned
            # slices (no XLU, no tile-boundary crossing), so the accumulator
            # read-modify-write below only touches (n, racc, lane).
            if rt == racc:
                return v
            acc = v[:, 0:racc, :]
            for g in range(1, rt // racc):
                acc = acc + v[:, g * racc:(g + 1) * racc, :]
            return acc

        inter_acc[...] += _fold(s * t)
        denom_acc[...] += _fold(s + t)
        bce_acc[...] += _fold(bce_elem)

    if exact_grid:
        _accumulate()
    else:
        # Odd block count split over 2 parallel slices: the single surplus
        # (p = 1, j = j_dim - 1) step re-reads the last valid block (index_map
        # is clamped) and is skipped here, so nothing is double-counted.
        p = pl.program_id(0)
        pl.when(p * j_dim + j < num_blocks)(_accumulate)

    @pl.when(j == j_dim - 1)
    def _finalize():
        # Small cross-sublane reduce once per parallel slice; the tiny
        # cross-lane combine happens in plain JAX outside the kernel.
        part_ref[0, 0, :, :] = jnp.sum(inter_acc[...], axis=1)
        part_ref[0, 1, :, :] = jnp.sum(denom_acc[...], axis=1)
        part_ref[0, 2, :, :] = jnp.sum(bce_acc[...], axis=1)


def _plan_tiling(d, n, itemsize):
    """Pick (lane, rows, rt, rows_pad, nb) for the (n, rows, lane) layout."""
    # Lane width: largest of (512, 256, 128) that divides d AND leaves >= 8 rows
    # (full sublane utilization); else largest that divides d; else pad (lane=128).
    lane = None
    for cand in (512, 256, 128):
        if d % cand == 0 and d // cand >= 8:
            lane = cand
            break
    if lane is None:
        for cand in (512, 256, 128):
            if d % cand == 0:
                lane = cand
                break
    needs_pad = lane is None
    if needs_pad:
        lane = 128
    rows = -(-d // lane)

    # ~2 MiB per input block (review item #2; up from 512 KiB). Resident VMEM is
    # ~2 inputs x 2 pipeline buffers x 2 MiB = 8 MiB + tiny accumulators, safe on
    # every generation including v7x's 64 MiB per-core VMEM.
    budget_rows = max(8, (2 * 1024 * 1024) // max(1, n * lane * itemsize))
    rt_cap = max(8, (budget_rows // 8) * 8)

    rt = None
    if not needs_pad:
        # Exact tiling (no jnp.pad): rt must divide rows and be a multiple of 8,
        # or be the full row extent.
        cands = [r for r in range(8, min(rows, rt_cap) + 1, 8) if rows % r == 0]
        if rows <= rt_cap:
            cands.append(rows)                   # full-extent block always legal
        even = [r for r in cands if (rows // r) % 2 == 0]
        if even:
            rt = max(even)                       # prefer even block count -> p_dim=2
        elif cands:
            rt = max(cands)
    if rt is None:
        # Ragged fallback: pad rows up to a multiple of a multiple-of-8 rt.
        rt = min(rt_cap, -(-rows // 8) * 8)
    rows_pad = -(-rows // rt) * rt
    nb = rows_pad // rt
    return lane, rows, rt, rows_pad, nb


def bce_dice_loss(logits, target, *, approx_sigmoid=False):
    """Pallas TPU implementation of BCEDiceLoss.forward(input, target)."""
    n = logits.shape[0]
    x = logits.reshape(n, -1)
    t = target.reshape(n, -1)
    d = x.shape[1]
    itemsize = jnp.dtype(x.dtype).itemsize

    lane, _, rt, rows_pad, nb = _plan_tiling(d, n, itemsize)

    d_pad = rows_pad * lane
    if d_pad != d:
        # Fallback only when d is not a multiple of 128 (or no usable exact row
        # tiling exists): padded logits=-100 / targets=0 contribute ~0 to every
        # sum (sigmoid(-100) and the stable-BCE term underflow to <= 4e-44).
        # TODO(synk): an in-kernel iota mask on the last block would avoid this
        # extra HBM read+write of the padded copies for such ragged shapes.
        x = jnp.pad(x, ((0, 0), (0, d_pad - d)), constant_values=-100.0)
        t = jnp.pad(t, ((0, 0), (0, d_pad - d)))
    # Row-major reshape is a free, copy-less layout change (no HBM traffic).
    x = x.reshape(n, rows_pad, lane)
    t = t.reshape(n, rows_pad, lane)

    # Grid: (parallel slices, reduction steps). p_dim >= 2 whenever there is more
    # than one block so v7x's second TensorCore is never idle (review item #5).
    if nb >= 2:
        p_dim = 2
        j_dim = -(-nb // 2)
    else:
        p_dim, j_dim = 1, 1
    exact = (p_dim * j_dim == nb)

    if exact:
        def in_map(p, j):
            return (0, p * j_dim + j, 0)
    else:
        last = nb - 1

        def in_map(p, j):
            # Clamp the one surplus step to the last valid block; the kernel
            # skips its accumulation via pl.when.
            return (0, jnp.minimum(p * j_dim + j, last), 0)

    racc = 8 if rt % 8 == 0 else rt

    kernel = functools.partial(
        _bce_dice_kernel,
        num_blocks=nb,
        exact_grid=exact,
        approx_sigmoid=approx_sigmoid,
    )

    parts = pl.pallas_call(
        kernel,
        out_shape=jax.ShapeDtypeStruct((p_dim, 3, n, lane), jnp.float32),
        grid_spec=pltpu.PrefetchScalarGridSpec(
            num_scalar_prefetch=0,
            grid=(p_dim, j_dim),
            in_specs=[
                pl.BlockSpec((n, rt, lane), in_map),
                pl.BlockSpec((n, rt, lane), in_map),
            ],
            out_specs=pl.BlockSpec((1, 3, n, lane), lambda p, j: (p, 0, 0, 0)),
            scratch_shapes=[
                pltpu.VMEM((n, racc, lane), jnp.float32),   # sum sigmoid * t
                pltpu.VMEM((n, racc, lane), jnp.float32),   # sum sigmoid + t
                pltpu.VMEM((n, racc, lane), jnp.float32),   # sum BCE elements
            ],
        ),
        compiler_params=pltpu.CompilerParams(
            dimension_semantics=("parallel", "arbitrary"),
            # Above v5e's 16 MiB default scoped limit, below v7x's 64 MiB
            # physical per-core VMEM; actual residency is only a few MiB.
            vmem_limit_bytes=48 * 1024 * 1024,
        ),
    )(x, t)

    # Tiny final combine (p_dim * 3 * n * lane values) in plain JAX.
    sums = jnp.sum(parts, axis=(0, 3))           # (3, n)
    inter, denom, bce_rows = sums[0], sums[1], sums[2]
    bce = jnp.sum(bce_rows) / (n * d)            # mean over the *real* elements
    smooth = 1e-05
    dice = (2.0 * inter + smooth) / (denom + smooth)
    dice_loss = 1.0 - jnp.sum(dice) / n
    return 0.5 * bce + dice_loss


def _reference(logits, target):
    """Plain-JAX reference mirroring the PyTorch module."""
    x = logits.astype(jnp.float32)
    t = target.astype(jnp.float32)
    bce = jnp.mean(jnp.maximum(x, 0.0) - x * t + jnp.log1p(jnp.exp(-jnp.abs(x))))
    smooth = 1e-05
    n = x.shape[0]
    xi = jax.nn.sigmoid(x).reshape(n, -1)
    ti = t.reshape(n, -1)
    inter = jnp.sum(xi * ti, axis=1)
    dice = (2.0 * inter + smooth) / (jnp.sum(xi, axis=1) + jnp.sum(ti, axis=1) + smooth)
    dice = 1.0 - jnp.sum(dice) / n
    return 0.5 * bce + dice


if __name__ == "__main__":
    key = jax.random.PRNGKey(0)

    # Primary small shape, consistent with a segmentation-style loss (NCHW).
    k1, k2 = jax.random.split(key)
    logits = jax.random.normal(k1, (2, 4, 16, 16), dtype=jnp.float32)
    target = (jax.random.uniform(k2, (2, 4, 16, 16)) > 0.5).astype(jnp.float32)

    loss = bce_dice_loss(logits, target)
    loss = jax.block_until_ready(loss)
    ref = _reference(logits, target)
    assert jnp.allclose(loss, ref, rtol=1e-4, atol=1e-5), (loss, ref)

    # Extra correctness checks for the perf-relevant paths:
    #  (2, 8, 64, 64) -> multi-block, p_dim=2, in-tile 8-row fold;
    #  (2, 3, 10, 10) -> ragged feature count, padded fallback path.
    for shape in ((2, 8, 64, 64), (2, 3, 10, 10)):
        ka, kb = jax.random.split(jax.random.PRNGKey(hash(shape) % (2**31)), 2)
        lg = jax.random.normal(ka, shape, dtype=jnp.float32)
        tg = (jax.random.uniform(kb, shape) > 0.5).astype(jnp.float32)
        out = jax.block_until_ready(bce_dice_loss(lg, tg))
        assert jnp.allclose(out, _reference(lg, tg), rtol=1e-4, atol=1e-5), shape

    print("KERNEL_OK")
</pallas_src>

<mosaic_0001>
module attributes {stable_mosaic.version = 11 : i64} {
  func.func @_bce_dice_kernel(%arg0: i32, %arg1: i32, %arg2: memref<2x8x128xf32, #tpu.memory_space<vmem>>, %arg3: memref<2x8x128xf32, #tpu.memory_space<vmem>>, %arg4: memref<1x3x2x128xf32, #tpu.memory_space<vmem>>, %arg5: memref<2x8x128xf32, #tpu.memory_space<vmem>>, %arg6: memref<2x8x128xf32, #tpu.memory_space<vmem>>, %arg7: memref<2x8x128xf32, #tpu.memory_space<vmem>>) attributes {dimension_semantics = [#tpu.dimension_semantics<parallel>, #tpu.dimension_semantics<arbitrary>], iteration_bounds = array<i64: 1, 1>, scalar_prefetch = 0 : i64, scratch_operands = 3 : i64, tpu.core_type = #tpu.core_type<tc>, window_params = [{transform_indices = @transform_0, window_bounds = array<i64: 2, 8, 128>}, {transform_indices = @transform_1, window_bounds = array<i64: 2, 8, 128>}, {transform_indices = @transform_2, window_bounds = array<i64: 1, 3, 2, 128>}]} {
    %c0_i32 = arith.constant 0 : i32
    %0 = arith.cmpi eq, %arg1, %c0_i32 : i32
    %1 = arith.extui %0 : i1 to i32
    %c0_i32_0 = arith.constant 0 : i32
    %2 = arith.cmpi ne, %1, %c0_i32_0 : i32
    scf.if %2 {
      %cst_30 = arith.constant 0.000000e+00 : f32
      %36 = vector.broadcast %cst_30 : f32 to vector<2x8x128xf32>
      %c0_31 = arith.constant 0 : index
      %c0_32 = arith.constant 0 : index
      %c0_33 = arith.constant 0 : index
      %37 = vector.load %arg5[%c0_31, %c0_32, %c0_33] : memref<2x8x128xf32, #tpu.memory_space<vmem>>, vector<2x8x128xf32>
      tpu.vector_store %arg5[%c0_31, %c0_32, %c0_33], %36 {strides = array<i32>} : memref<2x8x128xf32, #tpu.memory_space<vmem>>, vector<2x8x128xf32>,
      %cst_34 = arith.constant 0.000000e+00 : f32
      %38 = vector.broadcast %cst_34 : f32 to vector<2x8x128xf32>
      %c0_35 = arith.constant 0 : index
      %c0_36 = arith.constant 0 : index
      %c0_37 = arith.constant 0 : index
      %39 = vector.load %arg6[%c0_35, %c0_36, %c0_37] : memref<2x8x128xf32, #tpu.memory_space<vmem>>, vector<2x8x128xf32>
      tpu.vector_store %arg6[%c0_35, %c0_36, %c0_37], %38 {strides = array<i32>} : memref<2x8x128xf32, #tpu.memory_space<vmem>>, vector<2x8x128xf32>,
      %cst_38 = arith.constant 0.000000e+00 : f32
      %40 = vector.broadcast %cst_38 : f32 to vector<2x8x128xf32>
      %c0_39 = arith.constant 0 : index
      %c0_40 = arith.constant 0 : index
      %c0_41 = arith.constant 0 : index
      %41 = vector.load %arg7[%c0_39, %c0_40, %c0_41] : memref<2x8x128xf32, #tpu.memory_space<vmem>>, vector<2x8x128xf32>
      tpu.vector_store %arg7[%c0_39, %c0_40, %c0_41], %40 {strides = array<i32>} : memref<2x8x128xf32, #tpu.memory_space<vmem>>, vector<2x8x128xf32>,
    } else {
    }
    %c0 = arith.constant 0 : index
    %c0_1 = arith.constant 0 : index
    %c0_2 = arith.constant 0 : index
    %3 = vector.load %arg2[%c0, %c0_1, %c0_2] : memref<2x8x128xf32, #tpu.memory_space<vmem>>, vector<2x8x128xf32>
    %c0_3 = arith.constant 0 : index
    %c0_4 = arith.constant 0 : index
    %c0_5 = arith.constant 0 : index
    %4 = vector.load %arg3[%c0_3, %c0_4, %c0_5] : memref<2x8x128xf32, #tpu.memory_space<vmem>>, vector<2x8x128xf32>
    %5 = math.absf %3 : vector<2x8x128xf32>
    %cst = arith.constant 0.000000e+00 : f32
    %6 = vector.broadcast %cst : f32 to vector<2x8x128xf32>
    %7 = arith.subf %6, %5 : vector<2x8x128xf32>
    %8 = math.exp %7 : vector<2x8x128xf32>
    %cst_6 = arith.constant 0.000000e+00 : f32
    %9 = vector.broadcast %cst_6 : f32 to vector<2x8x128xf32>
    %10 = arith.maximumf %3, %9 : vector<2x8x128xf32>
    %11 = arith.mulf %3, %4 : vector<2x8x128xf32>
    %12 = arith.subf %10, %11 : vector<2x8x128xf32>
    %13 = math.log1p %8 : vector<2x8x128xf32>
    %14 = arith.addf %12, %13 : vector<2x8x128xf32>
    %cst_7 = arith.constant 0.000000e+00 : f32
    %15 = vector.broadcast %cst_7 : f32 to vector<2x8x128xf32>
    %16 = arith.cmpf oge, %3, %15 : vector<2x8x128xf32>
    %cst_8 = arith.constant 1.000000e+00 : f32
    %17 = vector.broadcast %cst_8 : f32 to vector<2x8x128xf32>
    %18 = arith.select %16, %17, %8 : vector<2x8x128xi1>, vector<2x8x128xf32>
    %cst_9 = arith.constant 1.000000e+00 : f32
    %19 = vector.broadcast %cst_9 : f32 to vector<2x8x128xf32>
    %20 = arith.addf %19, %8 : vector<2x8x128xf32>
    %21 = arith.divf %18, %20 : vector<2x8x128xf32>
    %c0_10 = arith.constant 0 : index
    %c0_11 = arith.constant 0 : index
    %c0_12 = arith.constant 0 : index
    %22 = vector.load %arg5[%c0_10, %c0_11, %c0_12] : memref<2x8x128xf32, #tpu.memory_space<vmem>>, vector<2x8x128xf32>
    %23 = arith.mulf %21, %4 : vector<2x8x128xf32>
    %24 = arith.addf %22, %23 : vector<2x8x128xf32>
    %c0_13 = arith.constant 0 : index
    %c0_14 = arith.constant 0 : index
    %c0_15 = arith.constant 0 : index
    %25 = vector.load %arg5[%c0_13, %c0_14, %c0_15] : memref<2x8x128xf32, #tpu.memory_space<vmem>>, vector<2x8x128xf32>
    tpu.vector_store %arg5[%c0_13, %c0_14, %c0_15], %24 {strides = array<i32>} : memref<2x8x128xf32, #tpu.memory_space<vmem>>, vector<2x8x128xf32>,
    %c0_16 = arith.constant 0 : index
    %c0_17 = arith.constant 0 : index
    %c0_18 = arith.constant 0 : index
    %26 = vector.load %arg6[%c0_16, %c0_17, %c0_18] : memref<2x8x128xf32, #tpu.memory_space<vmem>>, vector<2x8x128xf32>
    %27 = arith.addf %21, %4 : vector<2x8x128xf32>
    %28 = arith.addf %26, %27 : vector<2x8x128xf32>
    %c0_19 = arith.constant 0 : index
    %c0_20 = arith.constant 0 : index
    %c0_21 = arith.constant 0 : index
    %29 = vector.load %arg6[%c0_19, %c0_20, %c0_21] : memref<2x8x128xf32, #tpu.memory_space<vmem>>, vector<2x8x128xf32>
    tpu.vector_store %arg6[%c0_19, %c0_20, %c0_21], %28 {strides = array<i32>} : memref<2x8x128xf32, #tpu.memory_space<vmem>>, vector<2x8x128xf32>,
    %c0_22 = arith.constant 0 : index
    %c0_23 = arith.constant 0 : index
    %c0_24 = arith.constant 0 : index
    %30 = vector.load %arg7[%c0_22, %c0_23, %c0_24] : memref<2x8x128xf32, #tpu.memory_space<vmem>>, vector<2x8x128xf32>
    %31 = arith.addf %30, %14 : vector<2x8x128xf32>
    %c0_25 = arith.constant 0 : index
    %c0_26 = arith.constant 0 : index
    %c0_27 = arith.constant 0 : index
    %32 = vector.load %arg7[%c0_25, %c0_26, %c0_27] : memref<2x8x128xf32, #tpu.memory_space<vmem>>, vector<2x8x128xf32>
    tpu.vector_store %arg7[%c0_25, %c0_26, %c0_27], %31 {strides = array<i32>} : memref<2x8x128xf32, #tpu.memory_space<vmem>>, vector<2x8x128xf32>,
    %c0_i32_28 = arith.constant 0 : i32
    %33 = arith.cmpi eq, %arg1, %c0_i32_28 : i32
    %34 = arith.extui %33 : i1 to i32
    %c0_i32_29 = arith.constant 0 : i32
    %35 = arith.cmpi ne, %34, %c0_i32_29 : i32
    scf.if %35 {
      %c0_30 = arith.constant 0 : index
      %c0_31 = arith.constant 0 : index
      %c0_32 = arith.constant 0 : index
      %36 = vector.load %arg5[%c0_30, %c0_31, %c0_32] : memref<2x8x128xf32, #tpu.memory_space<vmem>>, vector<2x8x128xf32>
      %cst_33 = arith.constant dense<0.000000e+00> : vector<2x128xf32>
      %37 = vector.multi_reduction <add>, %36, %cst_33 [1] : vector<2x8x128xf32> to vector<2x128xf32>
      %c0_34 = arith.constant 0 : index
      %c0_35 = arith.constant 0 : index
      %c0_36 = arith.constant 0 : index
      %c0_37 = arith.constant 0 : index
      %38 = vector.load %arg4[%c0_34, %c0_35, %c0_36, %c0_37] : memref<1x3x2x128xf32, #tpu.memory_space<vmem>>, vector<1x1x2x128xf32>
      %39 = vector.shape_cast %38 : vector<1x1x2x128xf32> to vector<2x128xf32>
      %40 = vector.shape_cast %37 : vector<2x128xf32> to vector<1x1x2x128xf32>
      tpu.vector_store %arg4[%c0_34, %c0_35, %c0_36, %c0_37], %40 {strides = array<i32>} : memref<1x3x2x128xf32, #tpu.memory_space<vmem>>, vector<1x1x2x128xf32>,
      %c0_38 = arith.constant 0 : index
      %c0_39 = arith.constant 0 : index
      %c0_40 = arith.constant 0 : index
      %41 = vector.load %arg6[%c0_38, %c0_39, %c0_40] : memref<2x8x128xf32, #tpu.memory_space<vmem>>, vector<2x8x128xf32>
      %cst_41 = arith.constant dense<0.000000e+00> : vector<2x128xf32>
      %42 = vector.multi_reduction <add>, %41, %cst_41 [1] : vector<2x8x128xf32> to vector<2x128xf32>
      %c0_42 = arith.constant 0 : index
      %c1 = arith.constant 1 : index
      %c0_43 = arith.constant 0 : index
      %c0_44 = arith.constant 0 : index
      %43 = vector.load %arg4[%c0_42, %c1, %c0_43, %c0_44] : memref<1x3x2x128xf32, #tpu.memory_space<vmem>>, vector<1x1x2x128xf32>
      %44 = vector.shape_cast %43 : vector<1x1x2x128xf32> to vector<2x128xf32>
      %45 = vector.shape_cast %42 : vector<2x128xf32> to vector<1x1x2x128xf32>
      tpu.vector_store %arg4[%c0_42, %c1, %c0_43, %c0_44], %45 {strides = array<i32>} : memref<1x3x2x128xf32, #tpu.memory_space<vmem>>, vector<1x1x2x128xf32>,
      %c0_45 = arith.constant 0 : index
      %c0_46 = arith.constant 0 : index
      %c0_47 = arith.constant 0 : index
      %46 = vector.load %arg7[%c0_45, %c0_46, %c0_47] : memref<2x8x128xf32, #tpu.memory_space<vmem>>, vector<2x8x128xf32>
      %cst_48 = arith.constant dense<0.000000e+00> : vector<2x128xf32>
      %47 = vector.multi_reduction <add>, %46, %cst_48 [1] : vector<2x8x128xf32> to vector<2x128xf32>
      %c0_49 = arith.constant 0 : index
      %c2 = arith.constant 2 : index
      %c0_50 = arith.constant 0 : index
      %c0_51 = arith.constant 0 : index
      %48 = vector.load %arg4[%c0_49, %c2, %c0_50, %c0_51] : memref<1x3x2x128xf32, #tpu.memory_space<vmem>>, vector<1x1x2x128xf32>
      %49 = vector.shape_cast %48 : vector<1x1x2x128xf32> to vector<2x128xf32>
      %50 = vector.shape_cast %47 : vector<2x128xf32> to vector<1x1x2x128xf32>
      tpu.vector_store %arg4[%c0_49, %c2, %c0_50, %c0_51], %50 {strides = array<i32>} : memref<1x3x2x128xf32, #tpu.memory_space<vmem>>, vector<1x1x2x128xf32>,
    } else {
    }
    return
  }
  func.func @transform_0(%arg0: i32, %arg1: i32) -> (i32, i32, i32) {
    %c1_i32 = arith.constant 1 : i32
    %0 = arith.muli %arg0, %c1_i32 : i32
    %1 = arith.addi %0, %arg1 : i32
    %c0_i32 = arith.constant 0 : i32
    %c0_i32_0 = arith.constant 0 : i32
    %c0_i32_1 = arith.constant 0 : i32
    return %c0_i32, %1, %c0_i32_0 : i32, i32, i32
  }
  func.func @transform_1(%arg0: i32, %arg1: i32) -> (i32, i32, i32) {
    %c1_i32 = arith.constant 1 : i32
    %0 = arith.muli %arg0, %c1_i32 : i32
    %1 = arith.addi %0, %arg1 : i32
    %c0_i32 = arith.constant 0 : i32
    %c0_i32_0 = arith.constant 0 : i32
    %c0_i32_1 = arith.constant 0 : i32
    return %c0_i32, %1, %c0_i32_0 : i32, i32, i32
  }
  func.func @transform_2(%arg0: i32, %arg1: i32) -> (i32, i32, i32, i32) {
    %c0_i32 = arith.constant 0 : i32
    %c0_i32_0 = arith.constant 0 : i32
    %c0_i32_1 = arith.constant 0 : i32
    %c0_i32_2 = arith.constant 0 : i32
    return %arg0, %c0_i32, %c0_i32_0, %c0_i32_1 : i32, i32, i32, i32
  }
}

</mosaic_0001>

<bundles_post_ra>
// kernel: tpu_custom_call.1
= control target key start
LH: loop header
LB: loop body
LE: loop exit
PB: predicated region body
PF: predicated region fallthrough
CT: control target
= control target key end

     0   :  { %7 = vsyncpa [#allocation6], 0  ;;  %s334_s0 = inlined_call_operand.hbm [shape: f32[2,8,128], index: 0, kind: input, shape index: {}]   ;;  %s335_s1 = inlined_call_operand.hbm [shape: f32[2,8,128], index: 1, kind: input, shape index: {}]   ;;  %s336_s2 = inlined_call_operand.hbm [shape: f32[1,3,2,128], index: 2, kind: output, shape index: {}]  }
   0x1   :  { %8 = vsyncpa [#allocation9], 0 }
   0x2   :  { %9 = vsyncpa [#allocation7], 0  ;;  %s294_s9 = smov [#allocation5]  }
   0x3   :  { %s18_s10 = sshll.u32 %s294_s9, 4  ;;  %s19_s10 = int_to_ptr.vmem [resolvable:$true] %s18_s10 }
   0x4   :  { %s236_s11 = scalar_lea.vmem %s19_s10, 256  ;;  %p241_p1 = scmp.lt.s32.totalorder %s19_s10, %s19_s10 }
   0x5   :  { %p237_p0 = scmp.ne.s32.totalorder %s19_s10, %s236_s11  ;;  %p242_p2 = scmp.lt.s32.totalorder %s236_s11, %s236_s11 }
   0x7   :  { %p243_p3 = por %p242_p2, %p241_p1 }
   0x9   :  { %p244_p4 = pnand %p243_p3, %p237_p0 }
   0xb   :  { %247 = shalt.err (!%p244_p4)
}
   0xc   :  { %s295_s12 = smov 128   ;;  %s296_s13 = smov 8  }
   0xd   :  { %24 = dma.hbm_to_vmem [thread:$0]  %s334_s0, 256, %s19_s10, [#allocation6], %s295_s12, %s295_s12, %s296_s13  }
   0xe   :  { %s297_s16 = smov [#allocation8]  }
   0xf   :  { %s33_s17 = sshll.u32 %s297_s16, 4  ;;  %s34_s17 = int_to_ptr.vmem [resolvable:$true] %s33_s17 }
  0x10   :  { %s256_s18 = scalar_lea.vmem %s34_s17, 256  ;;  %p261_p6 = scmp.lt.s32.totalorder %s34_s17, %s34_s17 }
  0x11   :  { %p257_p5 = scmp.ne.s32.totalorder %s34_s17, %s256_s18  ;;  %p262_p7 = scmp.lt.s32.totalorder %s256_s18, %s256_s18 }
  0x13   :  { %p263_p8 = por %p262_p7, %p261_p6 }
  0x15   :  { %p264_p9 = pnand %p263_p8, %p257_p5 }
  0x17   :  { %267 = shalt.err (!%p264_p9)
}
  0x18   :  { %39 = dma.hbm_to_vmem [thread:$0]  %s335_s1, 256, %s34_s17, [#allocation9], %s295_s12, %s295_s12, %s296_s13  }
  0x19   :  { %288 = dma.done.wait [#allocation6], 256  }
  0x1a   :  { %289 = vsyncadd [#allocation6], 4294967040 }
  0x1b   :  { %290 = dma.done.wait [#allocation9], 256  }
  0x1c   :  { %291 = vsyncadd [#allocation9], 4294967040  ;;  %v58_v0 = vld [vmem:[#allocation5] sm:$0xff]  ;;  %v59_v1 = vld [vmem:[#allocation5 + $0x8] sm:$0xff]  ;;  %vm147_vm4 = vcmask 1041409   ;;  %s298_s0 = smov [#allocation10]  }
  0x1d   :  { %v62_v2 = vand.u32 2147483647, %v58_v0  ;;  %v63_v3 = vand.u32 2147483647, %v59_v1  ;;  %v60_v13 = vld [vmem:[#allocation8] sm:$0xff]  ;;  %v61_v15 = vld [vmem:[#allocation8 + $0x8] sm:$0xff] }
  0x1e   :  { %vm96_vm0 = vcmp.ge.f32.partialorder %v58_v0, 0.0  ;;  %vm97_vm1 = vcmp.ge.f32.partialorder %v59_v1, 0.0  ;;  %v70_v16 = vmax.f32 %v58_v0, 0.0  ;;  %v71_v17 = vmax.f32 %v59_v1, 0.0  ;;  %s196_s1 = sshll.u32 %s298_s0, 4  ;;  %s197_s1 = int_to_ptr.vmem [resolvable:$true] %s196_s1 }
  0x1f   :  { %v64_v4 = vsub.f32 0.0, %v62_v2  ;;  %v65_v5 = vsub.f32 0.0, %v63_v3  ;;  %v72_v18 = vmul.f32 %v60_v13, %v58_v0  ;;  %v73_v21 = vmul.f32 %v61_v15, %v59_v1  ;;  %s268_s21 = scalar_lea.vmem %s197_s1, 96  ;;  %p273_p11 = scmp.lt.s32.totalorder %s197_s1, %s197_s1 }
  0x20   :  { %p269_p10 = scmp.ne.s32.totalorder %s197_s1, %s268_s21  ;;  %p274_p12 = scmp.lt.s32.totalorder %s268_s21, %s268_s21 }
  0x21   :  { %v66_v6 = vmul.f32 1.442695, %v64_v4  ;;  %v68_v7 = vmul.f32 1.442695, %v65_v5  ;;  %v74_v29 = vsub.f32 %v70_v16, %v72_v18  ;;  %v75_v33 = vsub.f32 %v71_v17, %v73_v21 }
  0x22   :  { %p275_p13 = por %p274_p12, %p273_p11 }
  0x23   :  { %216 = vpow2.f32 %v66_v6 }
  0x24   :  { %218 = vpow2.f32 %v68_v7  ;;  %p276_p0 = pnand %p275_p13, %p269_p10 }
  0x30   :  { %v217_v8 = vpop.eup %216 }
  0x31   :  { %v219_v9 = vpop.eup %218  ;;  %v76_v10 = vadd.f32 1.0, %v217_v8  ;;  %v79_v12 = vmul.f32 -0.5, %v217_v8  ;;  %v98_v20 = vsel %vm96_vm0, 1.0, %v217_v8  ;;  %v82_v22 = vand.u32 2147483647, %v217_v8 }
  0x32   :  { %v85_v11 = vadd.f32 1.0, %v219_v9  ;;  %v88_v14 = vmul.f32 -0.5, %v219_v9  ;;  %v99_v24 = vsel %vm97_vm1, 1.0, %v219_v9  ;;  %v91_v25 = vand.u32 2147483647, %v219_v9 }
  0x33   :  { %220 = vrcp.f32 %v76_v10  ;;  %v80_v19 = vadd.f32 1.0, %v79_v12  ;;  %vm322_vm2 = vcmp.lt.f32.partialorder %v82_v22, 0.0004427343 }
  0x34   :  { %222 = vrcp.f32 %v85_v11  ;;  %v89_v23 = vadd.f32 1.0, %v88_v14  ;;  %vm92_vm3 = vcmp.lt.f32.partialorder %v91_v25, 0.0004427343 }
  0x35   :  { %224 = vlog2.f32 %v76_v10  ;;  %v81_v30 = vmul.f32 %v217_v8, %v80_v19 }
  0x36   :  { %226 = vlog2.f32 %v85_v11  ;;  %v90_v35 = vmul.f32 %v219_v9, %v89_v23 }
  0x40   :  { %v221_v26 = vpop.eup %220 }
  0x41   :  { %v223_v27 = vpop.eup %222  ;;  %v103_v28 = vmul.f32 %v221_v26, %v98_v20 }
  0x42   :  { %v225_v31 = vpop.eup %224  ;;  %v105_v32 = vmul.f32 %v223_v27, %v99_v24 }
  0x43   :  { %v227_v36 = vpop.eup %226  ;;  %v108_v37 = vmul.f32 %v103_v28, %v60_v13  ;;  %v116_v38 = vadd.f32 %v103_v28, %v60_v13  ;;  %v78_v39 = vmul.f32 0.6931472, %v225_v31 }
  0x44   :  { %v109_v40 = vmul.f32 %v105_v32, %v61_v15  ;;  %v117_v41 = vadd.f32 %v105_v32, %v61_v15  ;;  %v87_v42 = vmul.f32 0.6931472, %v227_v36 }
  0x45   :  { %v133_v43 = vrot.slane %v108_v37, 4  ;;  %v153_v44 = vrot.slane %v116_v38, 4  ;;  %v84_v45 = vsel %vm322_vm2, %v81_v30, %v78_v39 }
  0x46   :  { %v139_v46 = vrot.slane %v109_v40, 4  ;;  %v159_v47 = vrot.slane %v117_v41, 4  ;;  %v93_v48 = vsel %vm92_vm3, %v90_v35, %v87_v42  ;;  %v94_v49 = vadd.f32 %v84_v45, %v74_v29 }
  0x47   :  { %v134_v50 = vadd.f32 %v133_v43, %v108_v37  ;;  %v154_v51 = vadd.f32 %v153_v44, %v116_v38  ;;  %v95_v52 = vadd.f32 %v93_v48, %v75_v33 }
  0x48   :  { %v140_v53 = vadd.f32 %v139_v46, %v109_v40  ;;  %v160_v54 = vadd.f32 %v159_v47, %v117_v41  ;;  %v173_v55 = vrot.slane %v94_v49, 4 }
  0x49   :  { %v135_v56 = vrot.slane %v134_v50, 2  ;;  %v155_v57 = vrot.slane %v154_v51, 2  ;;  %v179_v58 = vrot.slane %v95_v52, 4 }
  0x4a   :  { %v141_v59 = vrot.slane %v140_v53, 2  ;;  %v161_v60 = vrot.slane %v160_v54, 2  ;;  %v174_v61 = vadd.f32 %v173_v55, %v94_v49 }
  0x4b   :  { %v136_v62 = vadd.f32 %v135_v56, %v134_v50  ;;  %v156_v63 = vadd.f32 %v155_v57, %v154_v51  ;;  %v180_v0 = vadd.f32 %v179_v58, %v95_v52 }
  0x4c   :  { %v142_v1 = vadd.f32 %v141_v59, %v140_v53  ;;  %v162_v2 = vadd.f32 %v161_v60, %v160_v54  ;;  %v175_v3 = vrot.slane %v174_v61, 2 }
  0x4d   :  { %v137_v4 = vrot.slane %v136_v62, 1  ;;  %v157_v5 = vrot.slane %v156_v63, 1  ;;  %v181_v6 = vrot.slane %v180_v0, 2 }
  0x4e   :  { %v143_v7 = vrot.slane %v142_v1, 1  ;;  %v163_v8 = vrot.slane %v162_v2, 1  ;;  %v176_v9 = vadd.f32 %v175_v3, %v174_v61 }
  0x4f   :  { %v138_v10 = vadd.f32 %v137_v4, %v136_v62  ;;  %v158_v11 = vadd.f32 %v157_v5, %v156_v63  ;;  %v182_v12 = vadd.f32 %v181_v6, %v180_v0 }
  0x50   :  { %v144_v13 = vadd.f32 %v143_v7, %v142_v1  ;;  %v164_v14 = vadd.f32 %v163_v8, %v162_v2  ;;  %v177_v15 = vrot.slane %v176_v9, 1 }
  0x51   :  { %v183_v16 = vrot.slane %v182_v12, 1 }
  0x52   :  { %v148_v17 = vsel %vm147_vm4, %v144_v13, %v138_v10  ;;  %v167_v18 = vsel %vm147_vm4, %v164_v14, %v158_v11  ;;  %v178_v19 = vadd.f32 %v177_v15, %v176_v9 }
  0x53   :  { %150 = vst [vmem:[#allocation10] sm:$0x3] %v148_v17  ;;  %170 = vst [vmem:[#allocation10 + $0x2] sm:$0x3] %v167_v18  ;;  %v184_v20 = vadd.f32 %v183_v16, %v182_v12 }
  0x55   :  { %v187_v21 = vsel %vm147_vm4, %v184_v20, %v178_v19 }
  0x56   :  { %190 = vst [vmem:[#allocation10 + $0x4] sm:$0x3] %v187_v21 }
  0x57   :  { %279 = shalt.err (!%p276_p0)
}
  0x58   :  { %s299_s22 = smov 32   ;;  %s300_s23 = smov 2  }
  0x59   :  { %202 = dma.vmem_to_hbm [thread:$0]  %s197_s1, 96, %s336_s2, [#allocation7], %s299_s22, %s299_s22, %s300_s23  }
  0x5a   :  { %292 = dma.done.wait [#allocation7], 96  }
  0x5b   :  { %293 = vsyncadd [#allocation7], 4294967200 }
  0x5c   :  { %206 = vsyncpa [#allocation6], 1 }
  0x5d   :  { %207 = vsyncpa [#allocation9], 1 }
  0x5e   :  { %208 = vsyncpa [#allocation7], 1 }

</bundles_post_ra>
